<compile_context>
chip_gen: v6e
topology: v6e:2x2x1
jax: 0.10.0
libtpu: 0.0.40
codegen_flags: <defaults>
</compile_context>

<pallas_src>
import jax
import jax.numpy as jnp
from jax.experimental import pallas as pl
from jax.experimental.pallas import tpu as pltpu

# ---- problem sizes (small, consistent with the module) ----
B = 2           # batch
N = 16          # graph nodes
D = 32          # in_dim (= in_src_dim)
H = 4           # num_heads
DH = D // H     # head dim = 8
OUT_DIM = 8     # out_dim
HO = H * OUT_DIM          # 32
HN = H * N                # 64
CW = HN + HO + H          # 100: fused fc output = [er_wide | out_fc(feat) | el]
NEG_SLOPE = 0.1

# ---- parameter-slab row offsets (multi-row regions are 8-aligned) ----
R_BIG_BIAS = 0             # row 0: fused fc bias            (1, CW)
R_OUT_BIAS = 1             # row 1: tiled out_fc bias        (1, HO)
R_WBIG = 8                 # rows [8, 8+D):   fused fc weight (D, CW)
R_MASK = R_WBIG + D        # rows [40, 104):  block-diag ones (HN, HO)
R_WT = R_MASK + HN         # rows [104, 136): edge weights    (B*N, HN)
SLAB_ROWS = R_WT + B * N   # 136 (multiple of 8)
SLAB_COLS = 128            # lane-dense slab


def make_gat_kernel(rb):
    """rb = number of batch elements folded into one grid step (rows = rb*N)."""
    rows = rb * N

    def kernel(x_ref, slab_ref, o_ref):
        # ---- static windows of the consolidated parameter slab ----
        wbig = slab_ref[pl.ds(R_WBIG, D), pl.ds(0, CW)]         # (D, CW)
        bbig = slab_ref[pl.ds(R_BIG_BIAS, 1), pl.ds(0, CW)]     # (1, CW)
        bout = slab_ref[pl.ds(R_OUT_BIAS, 1), pl.ds(0, HO)]     # (1, HO)
        mask = slab_ref[pl.ds(R_MASK, HN), pl.ds(0, HO)]        # (HN, HO)
        wt = slab_ref[pl.ds(R_WT, rows), pl.ds(0, HN)]          # (rows, HN)

        # 1) single fused projection: x @ W_big + b_big.
        #    columns: [0,HN)  er[dst,h] replicated over the N source slots,
        #             [HN,HN+HO) out_fc applied to feat (per head, no bias),
        #             [HN+HO,CW) el[src,h].
        big = jnp.dot(x_ref[...], wbig,
                      preferred_element_type=jnp.float32) + bbig        # (rows, CW)
        er_w = big[:, :HN]                                              # (rows, HN)
        fout = big[:, HN:HN + HO]                                       # (rows, HO)
        el = big[:, HN + HO:]                                           # (rows, H)

        # 2) move el to the lane axis: ONE small XLU transpose + static slices.
        el_t = el.T                                                     # (H, rows)
        el_parts = []
        for b in range(rb):                                             # static
            row_b = jnp.concatenate(
                [el_t[h:h + 1, b * N:(b + 1) * N] for h in range(H)],
                axis=1)                                                 # (1, HN)
            el_parts.append(jnp.broadcast_to(row_b, (N, HN)))
        el_full = el_parts[0] if rb == 1 else jnp.concatenate(el_parts, axis=0)

        # 3) all heads (and folded batches) at once: one leaky-relu / max / exp.
        #    Row-max over all heads of one destination is still an exact
        #    softmax shift (normalization below uses the same p).
        z = er_w + el_full                                              # (rows, HN)
        e = wt * jnp.maximum(z, NEG_SLOPE * z)                          # lrelu, then w
        m = jnp.max(e, axis=-1, keepdims=True)                          # (rows, 1)
        p = jnp.exp(e - m)                                              # (rows, HN)

        # 4) per-(dst, head) softmax denominators via one block-diag matmul.
        den = jnp.dot(p, mask, preferred_element_type=jnp.float32)      # (rows, HO)

        # 5) unnormalized aggregation; out_fc is already inside fout, the RHS is
        #    the block-diagonal (per-head) stack of fout for that batch element.
        num_parts = []
        for b in range(rb):                                             # static
            fout_b = fout[b * N:(b + 1) * N, :]                         # (N, HO)
            fbd = mask * jnp.concatenate([fout_b] * H, axis=0)          # (HN, HO)
            num_parts.append(
                jnp.dot(p[b * N:(b + 1) * N, :], fbd,
                        preferred_element_type=jnp.float32))            # (N, HO)
        num = num_parts[0] if rb == 1 else jnp.concatenate(num_parts, axis=0)

        # 6) deferred normalization + out_fc bias, single (rows, HO) store.
        o_ref[...] = num * pl.reciprocal(den, approx=False) + bout

    return kernel


def _pack_params(w_fc, b_fc, attn_l, attn_r, w_edge, w_out, b_out):
    """Trace-time algebraic folding of all parameters into one lane-dense slab."""
    wfc_t = w_fc.T                                                      # (D, D)
    wbd = jnp.zeros((D, HO), jnp.float32)      # block-diag W_out^T per head
    al_bd = jnp.zeros((D, H), jnp.float32)     # block-diag attn_left
    ar_bd = jnp.zeros((D, H), jnp.float32)     # block-diag attn_right
    for h in range(H):
        wbd = wbd.at[h * DH:(h + 1) * DH,
                     h * OUT_DIM:(h + 1) * OUT_DIM].set(w_out.T)
        al_bd = al_bd.at[h * DH:(h + 1) * DH, h].set(attn_l[h])
        ar_bd = ar_bd.at[h * DH:(h + 1) * DH, h].set(attn_r[h])
    # replicate each head's er over its N source lane-slots: (H, HN)
    rep = jnp.zeros((H, HN), jnp.float32)
    for h in range(H):
        rep = rep.at[h, h * N:(h + 1) * N].set(1.0)
    # fused fc weight/bias: one matmul yields [er_wide | out_fc(feat) | el]
    w_big = jnp.concatenate(
        [wfc_t @ ar_bd @ rep, wfc_t @ wbd, wfc_t @ al_bd], axis=1)      # (D, CW)
    b_big = jnp.concatenate(
        [b_fc @ ar_bd @ rep, b_fc @ wbd, b_fc @ al_bd], axis=1)         # (1, CW)
    # block-diag ones: per-head softmax sums + aggregation RHS mask
    mask = jnp.zeros((HN, HO), jnp.float32)
    for h in range(H):
        mask = mask.at[h * N:(h + 1) * N,
                       h * OUT_DIM:(h + 1) * OUT_DIM].set(1.0)
    # edge weights in (dst, (head, src)) orientation, replicated per batch
    wt_full = jnp.tile(w_edge.T, (B, H))                                # (B*N, HN)

    slab = jnp.zeros((SLAB_ROWS, SLAB_COLS), jnp.float32)
    slab = slab.at[R_BIG_BIAS, :CW].set(b_big[0])
    slab = slab.at[R_OUT_BIAS, :HO].set(jnp.tile(b_out, (1, H))[0])
    slab = slab.at[R_WBIG:R_WBIG + D, :CW].set(w_big)
    slab = slab.at[R_MASK:R_MASK + HN, :HO].set(mask)
    slab = slab.at[R_WT:R_WT + B * N, :HN].set(wt_full)
    return slab


def _fold_batch():
    """Fold both batch elements into one grid step on single-TensorCore chips
    (v5e/v6e).  Keep grid=(B,) 'parallel' when the device exposes two
    TensorCores (v7x / v4-style megacore) so each core takes one element."""
    try:
        kind = jax.devices()[0].device_kind.lower()
    except Exception:
        return True
    return not any(tag in kind for tag in ("v7", "7x", "v4"))


def gat_forward(x, w_fc, b_fc, attn_l, attn_r, w_edge, w_out, b_out,
                fold_batch=None):
    if fold_batch is None:
        fold_batch = _fold_batch()
    rb = B if fold_batch else 1
    rows = rb * N

    slab = _pack_params(w_fc, b_fc, attn_l, attn_r, w_edge, w_out, b_out)
    x2 = x.reshape(B * N, D)

    out2 = pl.pallas_call(
        make_gat_kernel(rb),
        out_shape=jax.ShapeDtypeStruct((B * N, HO), jnp.float32),
        grid_spec=pltpu.PrefetchScalarGridSpec(
            num_scalar_prefetch=0,
            grid=(B // rb,),
            in_specs=[
                pl.BlockSpec((rows, D), lambda g: (g, 0)),               # x (folded)
                pl.BlockSpec((SLAB_ROWS, SLAB_COLS), lambda g: (0, 0)),  # param slab
            ],
            out_specs=pl.BlockSpec((rows, HO), lambda g: (g, 0)),
        ),
        compiler_params=pltpu.CompilerParams(
            dimension_semantics=("parallel",)),
    )(x2, slab)
    # (B*N, H*OUT) -> (B, N, H, OUT)  == torch rst.transpose(0, 1)
    return out2.reshape(B, N, H, OUT_DIM)


def gat_reference(x, w_fc, b_fc, attn_l, attn_r, w_edge, w_out, b_out):
    """Pure-JAX reference mirroring the torch/DGL forward (dense graph)."""
    feat = x @ w_fc.T + b_fc                                 # (B, N, D)
    feat = feat.reshape(B, N, H, DH)                         # (B, N, H, DH)
    el = jnp.sum(feat * attn_l[None, None], axis=-1)         # (B, N, H)
    er = jnp.sum(feat * attn_r[None, None], axis=-1)         # (B, N, H)
    e = el[:, :, None, :] + er[:, None, :, :]                # (B, src, dst, H)
    e = jnp.where(e >= 0, e, NEG_SLOPE * e)
    e = w_edge[None, :, :, None] * e
    a = jax.nn.softmax(e, axis=1)                            # over src per dst
    agg = jnp.einsum('bijh,bihd->bjhd', a, feat)             # (B, dst, H, DH)
    return agg @ w_out.T + b_out                             # (B, N, H, OUT)


def init_params(key):
    """Deterministic parameter init (xavier_uniform w/ relu gain, like torch)."""
    k1, k2, k3, k4, k5, k6, k7 = jax.random.split(key, 7)
    gain = jnp.sqrt(2.0)  # calculate_gain('relu')
    lim_fc = gain * jnp.sqrt(6.0 / (D + D))
    w_fc = jax.random.uniform(k1, (D, D), jnp.float32, -lim_fc, lim_fc)
    b_fc = jax.random.uniform(k2, (1, D), jnp.float32, -0.1, 0.1)
    lim_a = gain * jnp.sqrt(6.0 / (H * DH + DH))
    attn_l = jax.random.uniform(k3, (H, DH), jnp.float32, -lim_a, lim_a)
    attn_r = jax.random.uniform(k4, (H, DH), jnp.float32, -lim_a, lim_a)
    lim_o = 1.0 / jnp.sqrt(DH)
    w_out = jax.random.uniform(k5, (OUT_DIM, DH), jnp.float32, -lim_o, lim_o)
    b_out = jax.random.uniform(k6, (1, OUT_DIM), jnp.float32, -lim_o, lim_o)
    w_edge = jax.random.uniform(k7, (N, N), jnp.float32, 0.1, 1.0)
    return w_fc, b_fc, attn_l, attn_r, w_out, b_out, w_edge


if __name__ == "__main__":
    key = jax.random.PRNGKey(0)
    kx, kp = jax.random.split(key)
    x = jax.random.normal(kx, (B, N, D), jnp.float32)
    w_fc, b_fc, attn_l, attn_r, w_out, b_out, w_edge = init_params(kp)

    out = gat_forward(x, w_fc, b_fc, attn_l, attn_r, w_edge, w_out, b_out)
    out = jax.block_until_ready(out)

    ref = gat_reference(x, w_fc, b_fc, attn_l, attn_r, w_edge, w_out, b_out)
    assert out.shape == (B, N, H, OUT_DIM), out.shape
    assert jnp.allclose(out, ref, rtol=1e-4, atol=1e-4), \
        float(jnp.max(jnp.abs(out - ref)))
    print("KERNEL_OK")
</pallas_src>

<mosaic_0001>
module attributes {stable_mosaic.version = 11 : i64} {
  func.func @kernel(%arg0: i32, %arg1: memref<32x32xf32, #tpu.memory_space<vmem>>, %arg2: memref<136x128xf32, #tpu.memory_space<vmem>>, %arg3: memref<32x32xf32, #tpu.memory_space<vmem>>) attributes {dimension_semantics = [#tpu.dimension_semantics<parallel>], iteration_bounds = array<i64: 1>, scalar_prefetch = 0 : i64, scratch_operands = 0 : i64, tpu.core_type = #tpu.core_type<tc>, window_params = [{transform_indices = @transform_0, window_bounds = array<i64: 32, 32>}, {pipeline_mode = #tpu.pipeline_mode<synchronous>, transform_indices = @transform_1, window_bounds = array<i64: 136, 128>}, {transform_indices = @transform_2, window_bounds = array<i64: 32, 32>}]} {
    %c8 = arith.constant 8 : index
    %c0 = arith.constant 0 : index
    %0 = vector.load %arg2[%c8, %c0] : memref<136x128xf32, #tpu.memory_space<vmem>>, vector<32x100xf32>
    %c0_0 = arith.constant 0 : index
    %c0_1 = arith.constant 0 : index
    %1 = vector.load %arg2[%c0_0, %c0_1] : memref<136x128xf32, #tpu.memory_space<vmem>>, vector<1x100xf32>
    %c1 = arith.constant 1 : index
    %c0_2 = arith.constant 0 : index
    %2 = vector.load %arg2[%c1, %c0_2] : memref<136x128xf32, #tpu.memory_space<vmem>>, vector<1x32xf32>
    %c40 = arith.constant 40 : index
    %c0_3 = arith.constant 0 : index
    %3 = vector.load %arg2[%c40, %c0_3] : memref<136x128xf32, #tpu.memory_space<vmem>>, vector<64x32xf32>
    %c104 = arith.constant 104 : index
    %c0_4 = arith.constant 0 : index
    %4 = vector.load %arg2[%c104, %c0_4] : memref<136x128xf32, #tpu.memory_space<vmem>>, vector<32x64xf32>
    %c0_5 = arith.constant 0 : index
    %c0_6 = arith.constant 0 : index
    %5 = vector.load %arg1[%c0_5, %c0_6] : memref<32x32xf32, #tpu.memory_space<vmem>>, vector<32x32xf32>
    %cst = arith.constant dense<0.000000e+00> : vector<32x100xf32>
    %6 = tpu.matmul %5, %0, %cst {dimension_numbers = #tpu.dot_dimension_numbers<[1], [0], [0], [1], [0, 0, 1, 1], [], []>} : vector<32x32xf32>, vector<32x100xf32>, vector<32x100xf32> -> vector<32x100xf32>
    %7 = vector.broadcast %1 : vector<1x100xf32> to vector<32x100xf32>
    %8 = arith.addf %6, %7 : vector<32x100xf32>
    %9 = vector.extract_strided_slice %8 {offsets = [0, 0], sizes = [32, 64], strides = [1, 1]} : vector<32x100xf32> to vector<32x64xf32>
    %10 = vector.extract_strided_slice %8 {offsets = [0, 64], sizes = [32, 32], strides = [1, 1]} : vector<32x100xf32> to vector<32x32xf32>
    %11 = vector.extract_strided_slice %8 {offsets = [0, 96], sizes = [32, 4], strides = [1, 1]} : vector<32x100xf32> to vector<32x4xf32>
    %12 = tpu.transpose %11, [1, 0] : vector<32x4xf32> -> vector<4x32xf32>
    %13 = vector.extract_strided_slice %12 {offsets = [0, 0], sizes = [1, 16], strides = [1, 1]} : vector<4x32xf32> to vector<1x16xf32>
    %14 = vector.extract_strided_slice %12 {offsets = [1, 0], sizes = [1, 16], strides = [1, 1]} : vector<4x32xf32> to vector<1x16xf32>
    %15 = vector.extract_strided_slice %12 {offsets = [2, 0], sizes = [1, 16], strides = [1, 1]} : vector<4x32xf32> to vector<1x16xf32>
    %16 = vector.extract_strided_slice %12 {offsets = [3, 0], sizes = [1, 16], strides = [1, 1]} : vector<4x32xf32> to vector<1x16xf32>
    %17 = tpu.concatenate %13, %14, %15, %16 in 1 : vector<1x16xf32>, vector<1x16xf32>, vector<1x16xf32>, vector<1x16xf32> -> vector<1x64xf32>
    %18 = vector.shape_cast %17 : vector<1x64xf32> to vector<1x64xf32>
    %19 = vector.broadcast %18 : vector<1x64xf32> to vector<16x64xf32>
    %20 = vector.extract_strided_slice %12 {offsets = [0, 16], sizes = [1, 16], strides = [1, 1]} : vector<4x32xf32> to vector<1x16xf32>
    %21 = vector.extract_strided_slice %12 {offsets = [1, 16], sizes = [1, 16], strides = [1, 1]} : vector<4x32xf32> to vector<1x16xf32>
    %22 = vector.extract_strided_slice %12 {offsets = [2, 16], sizes = [1, 16], strides = [1, 1]} : vector<4x32xf32> to vector<1x16xf32>
    %23 = vector.extract_strided_slice %12 {offsets = [3, 16], sizes = [1, 16], strides = [1, 1]} : vector<4x32xf32> to vector<1x16xf32>
    %24 = tpu.concatenate %20, %21, %22, %23 in 1 : vector<1x16xf32>, vector<1x16xf32>, vector<1x16xf32>, vector<1x16xf32> -> vector<1x64xf32>
    %25 = vector.shape_cast %24 : vector<1x64xf32> to vector<1x64xf32>
    %26 = vector.broadcast %25 : vector<1x64xf32> to vector<16x64xf32>
    %27 = tpu.concatenate %19, %26 in 0 : vector<16x64xf32>, vector<16x64xf32> -> vector<32x64xf32>
    %28 = arith.addf %9, %27 : vector<32x64xf32>
    %cst_7 = arith.constant 1.000000e-01 : f32
    %29 = vector.broadcast %cst_7 : f32 to vector<32x64xf32>
    %30 = arith.mulf %29, %28 : vector<32x64xf32>
    %31 = arith.maximumf %28, %30 : vector<32x64xf32>
    %32 = arith.mulf %4, %31 : vector<32x64xf32>
    %cst_8 = arith.constant dense<0xFF800000> : vector<32xf32>
    %33 = vector.multi_reduction <maximumf>, %32, %cst_8 [1] : vector<32x64xf32> to vector<32xf32>
    %34 = vector.shape_cast %33 : vector<32xf32> to vector<32x1xf32>
    %35 = vector.broadcast %34 : vector<32x1xf32> to vector<32x64xf32>
    %36 = arith.subf %32, %35 : vector<32x64xf32>
    %37 = math.exp %36 : vector<32x64xf32>
    %cst_9 = arith.constant dense<0.000000e+00> : vector<32x32xf32>
    %38 = tpu.matmul %37, %3, %cst_9 {dimension_numbers = #tpu.dot_dimension_numbers<[1], [0], [0], [1], [0, 0, 1, 1], [], []>} : vector<32x64xf32>, vector<64x32xf32>, vector<32x32xf32> -> vector<32x32xf32>
    %39 = vector.extract_strided_slice %10 {offsets = [0, 0], sizes = [16, 32], strides = [1, 1]} : vector<32x32xf32> to vector<16x32xf32>
    %40 = tpu.concatenate %39, %39, %39, %39 in 0 : vector<16x32xf32>, vector<16x32xf32>, vector<16x32xf32>, vector<16x32xf32> -> vector<64x32xf32>
    %41 = arith.mulf %3, %40 : vector<64x32xf32>
    %42 = vector.extract_strided_slice %37 {offsets = [0, 0], sizes = [16, 64], strides = [1, 1]} : vector<32x64xf32> to vector<16x64xf32>
    %cst_10 = arith.constant dense<0.000000e+00> : vector<16x32xf32>
    %43 = tpu.matmul %42, %41, %cst_10 {dimension_numbers = #tpu.dot_dimension_numbers<[1], [0], [0], [1], [0, 0, 1, 1], [], []>} : vector<16x64xf32>, vector<64x32xf32>, vector<16x32xf32> -> vector<16x32xf32>
    %44 = vector.extract_strided_slice %10 {offsets = [16, 0], sizes = [16, 32], strides = [1, 1]} : vector<32x32xf32> to vector<16x32xf32>
    %45 = tpu.concatenate %44, %44, %44, %44 in 0 : vector<16x32xf32>, vector<16x32xf32>, vector<16x32xf32>, vector<16x32xf32> -> vector<64x32xf32>
    %46 = arith.mulf %3, %45 : vector<64x32xf32>
    %47 = vector.extract_strided_slice %37 {offsets = [16, 0], sizes = [16, 64], strides = [1, 1]} : vector<32x64xf32> to vector<16x64xf32>
    %cst_11 = arith.constant dense<0.000000e+00> : vector<16x32xf32>
    %48 = tpu.matmul %47, %46, %cst_11 {dimension_numbers = #tpu.dot_dimension_numbers<[1], [0], [0], [1], [0, 0, 1, 1], [], []>} : vector<16x64xf32>, vector<64x32xf32>, vector<16x32xf32> -> vector<16x32xf32>
    %49 = tpu.concatenate %43, %48 in 0 : vector<16x32xf32>, vector<16x32xf32> -> vector<32x32xf32>
    %50 = tpu.reciprocal %38 : vector<32x32xf32> -> vector<32x32xf32>
    %51 = arith.mulf %49, %50 : vector<32x32xf32>
    %52 = vector.broadcast %2 : vector<1x32xf32> to vector<32x32xf32>
    %53 = arith.addf %51, %52 : vector<32x32xf32>
    %c0_12 = arith.constant 0 : index
    %c0_13 = arith.constant 0 : index
    %54 = vector.load %arg3[%c0_12, %c0_13] : memref<32x32xf32, #tpu.memory_space<vmem>>, vector<32x32xf32>
    tpu.vector_store %arg3[%c0_12, %c0_13], %53 {strides = array<i32>} : memref<32x32xf32, #tpu.memory_space<vmem>>, vector<32x32xf32>,
    return
  }
  func.func @transform_0(%arg0: i32) -> (i32, i32) {
    %c0_i32 = arith.constant 0 : i32
    %c0_i32_0 = arith.constant 0 : i32
    return %arg0, %c0_i32 : i32, i32
  }
  func.func @transform_1(%arg0: i32) -> (i32, i32) {
    %c0_i32 = arith.constant 0 : i32
    %c0_i32_0 = arith.constant 0 : i32
    %c0_i32_1 = arith.constant 0 : i32
    return %c0_i32, %c0_i32_0 : i32, i32
  }
  func.func @transform_2(%arg0: i32) -> (i32, i32) {
    %c0_i32 = arith.constant 0 : i32
    %c0_i32_0 = arith.constant 0 : i32
    return %arg0, %c0_i32 : i32, i32
  }
}

</mosaic_0001>

<bundles_post_ra>
// kernel: tpu_custom_call.1
= control target key start
LH: loop header
LB: loop body
LE: loop exit
PB: predicated region body
PF: predicated region fallthrough
CT: control target
= control target key end

     0   :  { %7 = vsyncpa [#allocation3], 0  ;;  %s955_s0 = inlined_call_operand.hbm [shape: f32[32,32], index: 0, kind: input, shape index: {}]   ;;  %s956_s1 = inlined_call_operand.hbm [shape: f32[136,128], index: 1, kind: input, shape index: {}]   ;;  %s957_s2 = inlined_call_operand.hbm [shape: f32[32,32], index: 2, kind: output, shape index: {}]  }
   0x1   :  { %8 = vsyncpa [#allocation6], 0 }
   0x2   :  { %9 = vsyncpa [#allocation4], 0  ;;  %s826_s9 = smov [#allocation2]  }
   0x3   :  { %s15_s10 = sshll.u32 %s826_s9, 4  ;;  %s16_s10 = int_to_ptr.vmem [resolvable:$true] %s15_s10 }
   0x4   :  { %s768_s11 = scalar_lea.vmem %s16_s10, 512  ;;  %p773_p1 = scmp.lt.s32.totalorder %s16_s10, %s16_s10 }
   0x5   :  { %p769_p0 = scmp.ne.s32.totalorder %s16_s10, %s768_s11  ;;  %p774_p2 = scmp.lt.s32.totalorder %s768_s11, %s768_s11 }
   0x7   :  { %p775_p3 = por %p774_p2, %p773_p1 }
   0x9   :  { %p776_p4 = pnand %p775_p3, %p769_p0 }
   0xb   :  { %779 = shalt.err (!%p776_p4)
}
   0xc   :  { %s827_s12 = smov 128   ;;  %s828_s13 = smov 8  }
   0xd   :  { %21 = dma.hbm_to_vmem [thread:$0]  %s955_s0, 512, %s16_s10, [#allocation3], %s827_s12, %s827_s12, %s828_s13  }
   0xe   :  { %s829_s16 = smov [#allocation5]  }
   0xf   :  { %s27_s17 = sshll.u32 %s829_s16, 4  ;;  %s28_s17 = int_to_ptr.vmem [resolvable:$true] %s27_s17 }
  0x10   :  { %s788_s18 = scalar_lea.vmem %s28_s17, 2176  ;;  %p793_p6 = scmp.lt.s32.totalorder %s28_s17, %s28_s17 }
  0x11   :  { %p789_p5 = scmp.ne.s32.totalorder %s28_s17, %s788_s18  ;;  %p794_p7 = scmp.lt.s32.totalorder %s788_s18, %s788_s18 }
  0x13   :  { %p795_p8 = por %p794_p7, %p793_p6 }
  0x15   :  { %p796_p9 = pnand %p795_p8, %p789_p5 }
  0x17   :  { %799 = shalt.err (!%p796_p9)
}
  0x18   :  { %33 = dma.hbm_to_vmem [thread:$0]  %s956_s1, 2176, %s28_s17, [#allocation6], %s827_s12, %s827_s12, %s828_s13  }
  0x19   :  { %820 = dma.done.wait [#allocation3], 512  }
  0x1a   :  { %821 = vsyncadd [#allocation3], 4294966784 }
  0x1b   :  { %822 = dma.done.wait [#allocation6], 2176  }
  0x1c   :  { %823 = vsyncadd [#allocation6], 4294965120  ;;  %vm66_vm0 = vcmask 261120   ;;  %v43_v0 = vld [vmem:[#allocation5 + $0x20] sm:$0xff]  ;;  %v42_v1 = vld [vmem:[#allocation5 + $0x18] sm:$0xff]  ;;  %s830_s0 = smov 32   ;;  %v230_v26 = vlaneseq }
  0x1d   :  { %659 = vmatprep.subr.mxu0 %v43_v0  ;;  %v58_v2 = vld [vmem:[#allocation2] sm:$0xff]  ;;  %v41_v3 = vld [vmem:[#allocation5 + $0x10] sm:$0xff]  ;;  %v40_v4 = vld [vmem:[#allocation5 + $0x8] sm:$0xff]  ;;  %s831_s1 = smov 112   ;;  %s832_s21 = smov 16   ;;  %vm225_vm1 = vcmask 130048  }
  0x1e   :  { %660 = vmatpush3.msra.mxu0 %v43_v0  ;;  %667 = vmatprep.mubr.msk.f32.mxu0 %vm66_vm0, %v58_v2  ;;  %v59_v5 = vld [vmem:[#allocation2 + $0x8] sm:$0xff]  ;;  %v60_v6 = vld [vmem:[#allocation2 + $0x10] sm:$0xff]  ;;  %v61_v7 = vld [vmem:[#allocation2 + $0x18] sm:$0xff]  ;;  %s833_s22 = smov 48   ;;  %v231_v28 = vshrl.u32 %v230_v26, 7  ;;  %vm228_vm2 = vcmask 392192  }
  0x1f   :  { %661 = vmatprep.subr.mxu0 %v42_v1  ;;  %v605_v9 = vld [vmem:[#allocation5] ss:$0 sm:$0xff]  ;;  %v55_v42 = vld [vmem:[#allocation5 + $0x70] sm:$0xff]  ;;  %v54_v43 = vld [vmem:[#allocation5 + $0x68] sm:$0xff]  ;;  %vm267_vm3 = vcmask 523264   ;;  %s834_s23 = smov 64  }
  0x20   :  { %662 = vmatpush3.msra.mxu0 %v42_v1  ;;  %v232_v30 = vsub.s32 0, %v231_v28  ;;  %v56_v58 = vld [vmem:[#allocation5 + $0x78] sm:$0xff]  ;;  %v57_v61 = vld [vmem:[#allocation5 + $0x80] sm:$0xff]  ;;  %s835_s24 = smov [#allocation7]  }
  0x21   :  { %663 = vmatprep.subr.mxu0 %v41_v3  ;;  %v53_v2 = vld [vmem:[#allocation5 + $0x60] sm:$0xff]  ;;  %s592_s25 = sshll.u32 %s835_s24, 4  ;;  %s593_s25 = int_to_ptr.vmem [resolvable:$true] %s592_s25 }
  0x22   :  { %664 = vmatpush3.msra.mxu0 %v41_v3  ;;  %673 = vmatprep.subr.mxu1 %v53_v2  ;;  %v891_v3 = vld [vmem:[#allocation5 + $0x58] sm:$0xff]  ;;  %s800_s26 = scalar_lea.vmem %s593_s25, 512  ;;  %p805_p11 = scmp.lt.s32.totalorder %s593_s25, %s593_s25 }
  0x23   :  { %665 = vmatprep.subr.mxu0 %v40_v4  ;;  %674 = vmatpush3.msra.mxu1 %v53_v2  ;;  %p801_p10 = scmp.ne.s32.totalorder %s593_s25, %s800_s26  ;;  %p806_p12 = scmp.lt.s32.totalorder %s800_s26, %s800_s26 }
  0x24   :  { %666 = vmatpush3.msra.mxu0 %v40_v4  ;;  %v893_v4 = vld [vmem:[#allocation5 + $0x50] sm:$0xff]  ;;  %675 = vmatprep.subr.mxu1 %v891_v3 }
  0x25   :  { %668 = vmatmul.mubr.msk.f32.vlgmr.msra.gmra.mxu0 %vm66_vm0, %v59_v5  ;;  %676 = vmatpush3.msra.mxu1 %v891_v3  ;;  %v898_v5 = vld [vmem:[#allocation5 + $0x48] sm:$0xff]  ;;  %p807_p13 = por %p806_p12, %p805_p11 }
  0x26   :  { %670 = vmatprep.mubr.msk.f32.mxu0 %vm66_vm0, %v60_v6  ;;  %677 = vmatprep.subr.mxu1 %v893_v4  ;;  %v903_v6 = vld [vmem:[#allocation5 + $0x40] sm:$0xff] }
  0x27   :  { %678 = vmatpush3.msra.mxu1 %v893_v4  ;;  %p808_p0 = pnand %p807_p13, %p801_p10 }
  0x28   :  { %679 = vmatprep.subr.mxu1 %v898_v5 }
  0x29   :  { %671 = vmatmul.mubr.msk.f32.gmra.mxu0 %vm66_vm0, %v61_v7  ;;  %680 = vmatpush3.msra.mxu1 %v898_v5  ;;  %v907_v7 = vld [vmem:[#allocation5 + $0x38] sm:$0xff] }
  0x2a   :  { %681 = vmatprep.subr.mxu1 %v903_v6 }
  0x2b   :  { %682 = vmatpush3.msra.mxu1 %v903_v6 }
  0x2c   :  { %683 = vmatprep.subr.mxu1 %v907_v7 }
  0x2d   :  { %684 = vmatpush3.msra.mxu1 %v907_v7 }
  0xe5   :  { %v669_v8 = vpop.f32.mrf.mxu0 }
  0xe6   :  { %v870_v14 = vadd.f32 %v669_v8, %v605_v9  ;;  %v912_v8 = vld [vmem:[#allocation5 + $0x30] sm:$0xff] }
  0xe7   :  { %v145_v10 = vpop.f32.mrf.mxu0  ;;  %685 = vmatprep.subr.mxu1 %v912_v8 }
  0xe8   :  { %v867_v11 = vadd.f32 %v605_v9, %v145_v10  ;;  %686 = vmatpush3.msra.mxu1 %v912_v8 }
  0xe9   :  { %v672_v12 = vpop.f32.mrf.mxu0 }
  0xea   :  { %168 = vrot.lane.b32.xlu0 %v867_v11, %s830_s0  ;;  %v876_v16 = vadd.f32 %v672_v12, %v605_v9 }
  0xeb   :  { %v155_v13 = vpop.f32.mrf.mxu0 }
  0xec   :  { %v872_v15 = vadd.f32 %v605_v9, %v155_v13  ;;  %v915_v9 = vld [vmem:[#allocation5 + $0x28] sm:$0xff] }
  0xed   :  { %687 = vmatprep.subr.mxu1 %v915_v9 }
  0xee   :  { %172 = vrot.lane.b32.xlu1 %v872_v15, %s830_s0  ;;  %170 = vrot.lane.b32.xlu0 %v870_v14, %s830_s0 }
  0xef   :  { %688 = vmatpush3.msra.mxu1 %v915_v9 }
  0xf2   :  { %174 = vrot.lane.b32.xlu1 %v876_v16, %s830_s0 }
 0x15c   :  { %v169_v17 = vpop.permute.xlu0 %168 }
 0x15d   :  { %180 = vxpose.xlu0.b32.start [1/4] (short) (narrow) %v169_v17, 8 }
 0x160   :  { %v171_v18 = vpop.permute.xlu0 %170  ;;  %v173_v19 = vpop.permute.xlu1 %172 }
 0x161   :  { %181 = vxpose.xlu0.b32.cont [2/4] (short) (narrow) %v171_v18, 8 }
 0x164   :  { %v175_v20 = vpop.permute.xlu1 %174 }
 0x165   :  { %182 = vxpose.xlu0.b32.cont [3/4] (short) (narrow) %v173_v19, 8 }
 0x169   :  { %183 = vxpose.xlu0.b32.end [4/4] (short) (narrow) %v175_v20, 8 }
 0x1d9   :  { %v196_v21 = vpop.trf.xlu0 }
 0x1da   :  { %234 = vrot.lane.b32.xlu1 %v196_v21, %s831_s1  ;;  %v213_v22 = vrot.slane %v196_v21, 1  ;;  %v217_v23 = vrot.slane %v196_v21, 2  ;;  %v221_v24 = vrot.slane %v196_v21, 3 }
 0x1de   :  { %214 = vrot.lane.b32.xlu1 %v213_v22, %s832_s21 }
 0x1e2   :  { %218 = vrot.lane.b32.xlu1 %v217_v23, %s830_s0 }
 0x1e6   :  { %222 = vrot.lane.b32.xlu1 %v221_v24, %s833_s22 }
 0x1ea   :  { %238 = vrot.lane.b32.xlu1 %v217_v23, %s832_s21 }
 0x1ee   :  { %241 = vrot.lane.b32.xlu1 %v221_v24, %s830_s0 }
 0x24c   :  { %v235_v25 = vpop.permute.xlu1 %234 }
 0x24d   :  { %v244_v41 = vsel %vm225_vm1, %v235_v25, %v213_v22 }
 0x250   :  { %v215_v27 = vpop.permute.xlu1 %214 }
 0x251   :  { %v226_v31 = vsel %vm225_vm1, %v196_v21, %v215_v27 }
 0x254   :  { %v219_v29 = vpop.permute.xlu1 %218 }
 0x255   :  { %v227_v32 = vsel %vm66_vm0, %v226_v31, %v219_v29 }
 0x258   :  { %v223_v33 = vpop.permute.xlu1 %222 }
 0x259   :  { %v229_v34 = vsel %vm228_vm2, %v227_v32, %v223_v33 }
 0x25a   :  { %v233_v35 = vrot.slane %v229_v34, %v232_v30 }
 0x25c   :  { %v251_v36 = vadd.f32 %v233_v35, %v867_v11  ;;  %v252_v37 = vadd.f32 %v233_v35, %v870_v14  ;;  %v239_v38 = vpop.permute.xlu1 %238 }
 0x25d   :  { %v245_v44 = vsel %vm66_vm0, %v244_v41, %v239_v38 }
 0x25e   :  { %v256_v39 = vmul.f32 0.1, %v252_v37  ;;  %v255_v40 = vmul.f32 0.1, %v251_v36 }
 0x260   :  { %v242_v45 = vpop.permute.xlu1 %241  ;;  %v260_v46 = vmax.f32 %v252_v37, %v256_v39  ;;  %v259_v47 = vmax.f32 %v251_v36, %v255_v40 }
 0x261   :  { %v246_v48 = vsel %vm228_vm2, %v245_v44, %v242_v45 }
 0x262   :  { %v250_v49 = vrot.slane %v246_v48, %v232_v30  ;;  %v264_v50 = vmul.f32 %v260_v46, %v55_v42  ;;  %v263_v51 = vmul.f32 %v259_v47, %v54_v43 }
 0x264   :  { %v253_v52 = vadd.f32 %v250_v49, %v872_v15  ;;  %v254_v53 = vadd.f32 %v250_v49, %v876_v16  ;;  %v271_v54 = vsel %vm267_vm3, %v264_v50, -inf  ;;  %v268_v55 = vsel %vm267_vm3, %v263_v51, -inf }
 0x265   :  { %272 = vmax.xlane.f32.xlu0 %v271_v54  ;;  %269 = vmax.xlane.f32.xlu1 %v268_v55 }
 0x266   :  { %v257_v56 = vmul.f32 0.1, %v253_v52  ;;  %v258_v57 = vmul.f32 0.1, %v254_v53 }
 0x268   :  { %v261_v59 = vmax.f32 %v253_v52, %v257_v56  ;;  %v262_v60 = vmax.f32 %v254_v53, %v258_v57  ;;  %v618_v52 = vld [vmem:[#allocation5 + $0x1] ss:$0 sm:$0xff] }
 0x26a   :  { %v265_v62 = vmul.f32 %v261_v59, %v56_v58  ;;  %v266_v0 = vmul.f32 %v262_v60, %v57_v61 }
 0x26c   :  { %v274_v63 = vsel %vm267_vm3, %v265_v62, -inf  ;;  %v277_v1 = vsel %vm267_vm3, %v266_v0, -inf }
 0x26d   :  { %275 = vmax.xlane.f32.xlu1 %v274_v63 }
 0x271   :  { %278 = vmax.xlane.f32.xlu1 %v277_v1 }
 0x27b   :  { %389 = vrot.lane.b32.xlu0 %v867_v11, %s834_s23 }
 0x282   :  { %391 = vrot.lane.b32.xlu1 %v870_v14, %s834_s23 }
 0x286   :  { %480 = vrot.lane.b32.xlu1 %v876_v16, %s834_s23 }
 0x28a   :  { %478 = vrot.lane.b32.xlu1 %v872_v15, %s834_s23 }
 0x2ee   :  { %v273_v10 = vpop.xlane.xlu0 %272  ;;  %v270_v11 = vpop.xlane.xlu1 %269 }
 0x2ef   :  { %v281_v12 = vsub.f32 %v264_v50, %v273_v10  ;;  %v280_v13 = vsub.f32 %v263_v51, %v270_v11 }
 0x2f1   :  { %v286_v17 = vmul.f32 1.442695, %v281_v12  ;;  %v284_v18 = vmul.f32 1.442695, %v280_v13 }
 0x2f2   :  { %v390_v25 = vpop.permute.xlu0 %389 }
 0x2f3   :  { %744 = vpow2.f32 %v286_v17  ;;  %v401_v27 = vmul.f32 %v390_v25, %v891_v3  ;;  %v399_v31 = vmul.f32 %v390_v25, %v898_v5  ;;  %v397_v36 = vmul.f32 %v390_v25, %v907_v7 }
 0x2f4   :  { %746 = vpow2.f32 %v284_v18  ;;  %v395_v41 = vmul.f32 %v390_v25, %v915_v9 }
 0x2f6   :  { %v276_v19 = vpop.xlane.xlu1 %275 }
 0x2f7   :  { %v282_v20 = vsub.f32 %v265_v62, %v276_v19 }
 0x2f9   :  { %v288_v21 = vmul.f32 1.442695, %v282_v20 }
 0x2fa   :  { %v279_v22 = vpop.xlane.xlu1 %278 }
 0x2fb   :  { %748 = vpow2.f32 %v288_v21  ;;  %v283_v14 = vsub.f32 %v266_v0, %v279_v22 }
 0x2fd   :  { %v290_v23 = vmul.f32 1.442695, %v283_v14 }
 0x2fe   :  { %v392_v24 = vpop.permute.xlu1 %391 }
 0x2ff   :  { %750 = vpow2.f32 %v290_v23  ;;  %v402_v16 = vmul.f32 %v392_v24, %v53_v2  ;;  %v400_v30 = vmul.f32 %v392_v24, %v893_v4  ;;  %v398_v35 = vmul.f32 %v392_v24, %v903_v6 }
 0x300   :  { %v745_v15 = vpop.eup %744  ;;  %v396_v39 = vmul.f32 %v392_v24, %v912_v8 }
 0x301   :  { %v747_v26 = vpop.eup %746  ;;  %695 = vmatprep.subr.mxu0 %v402_v16 }
 0x302   :  { %689 = vmatprep.mubr.msk.f32.mxu1 %vm267_vm3, %v747_v26  ;;  %711 = vmatprep.mubr.msk.f32.mxu0 %vm267_vm3, %v747_v26  ;;  %v481_v28 = vpop.permute.xlu1 %480 }
 0x303   :  { %690 = vmatmul.mubr.msk.f32.vlgmr.msra.gmra.mxu1 %vm267_vm3, %v745_v15  ;;  %696 = vmatpush3.msra.mxu0 %v402_v16  ;;  %v491_v29 = vmul.f32 %v481_v28, %v53_v2  ;;  %v489_v37 = vmul.f32 %v481_v28, %v893_v4  ;;  %v487_v42 = vmul.f32 %v481_v28, %v903_v6 }
 0x304   :  { %697 = vmatprep.subr.mxu0 %v401_v27  ;;  %v485_v44 = vmul.f32 %v481_v28, %v912_v8 }
 0x305   :  { %698 = vmatpush3.msra.mxu0 %v401_v27  ;;  %714 = vmatprep.subr.mxu1 %v491_v29 }
 0x306   :  { %699 = vmatprep.subr.mxu0 %v400_v30  ;;  %715 = vmatpush3.msra.mxu1 %v491_v29  ;;  %v479_v32 = vpop.permute.xlu1 %478 }
 0x307   :  { %700 = vmatpush3.msra.mxu0 %v400_v30  ;;  %v490_v33 = vmul.f32 %v479_v32, %v891_v3  ;;  %v488_v40 = vmul.f32 %v479_v32, %v898_v5  ;;  %v486_v43 = vmul.f32 %v479_v32, %v907_v7  ;;  %v484_v45 = vmul.f32 %v479_v32, %v915_v9 }
 0x308   :  { %v749_v34 = vpop.eup %748  ;;  %701 = vmatprep.subr.mxu0 %v399_v31 }
 0x309   :  { %702 = vmatpush3.msra.mxu0 %v399_v31  ;;  %692 = vmatprep.mubr.msk.f32.mxu1 %vm267_vm3, %v749_v34 }
 0x30a   :  { %703 = vmatprep.subr.mxu0 %v398_v35  ;;  %716 = vmatprep.subr.mxu1 %v490_v33 }
 0x30b   :  { %704 = vmatpush3.msra.mxu0 %v398_v35  ;;  %717 = vmatpush3.msra.mxu1 %v490_v33 }
 0x30c   :  { %v751_v38 = vpop.eup %750  ;;  %705 = vmatprep.subr.mxu0 %v397_v36  ;;  %718 = vmatprep.subr.mxu1 %v489_v37 }
 0x30d   :  { %706 = vmatpush3.msra.mxu0 %v397_v36  ;;  %719 = vmatpush3.msra.mxu1 %v489_v37 }
 0x30e   :  { %693 = vmatmul.mubr.msk.f32.gmra.mxu1 %vm267_vm3, %v751_v38  ;;  %707 = vmatprep.subr.mxu0 %v396_v39 }
 0x30f   :  { %720 = vmatprep.subr.mxu1 %v488_v40  ;;  %708 = vmatpush3.msra.mxu0 %v396_v39 }
 0x310   :  { %721 = vmatpush3.msra.mxu1 %v488_v40  ;;  %730 = vmatprep.mubr.msk.f32.mxu1 %vm267_vm3, %v749_v34 }
 0x311   :  { %709 = vmatprep.subr.mxu0 %v395_v41  ;;  %722 = vmatprep.subr.mxu1 %v487_v42 }
 0x312   :  { %710 = vmatpush3.msra.mxu0 %v395_v41  ;;  %723 = vmatpush3.msra.mxu1 %v487_v42 }
 0x313   :  { %712 = vmatmul.mubr.msk.f32.vlgmr.msra.gmra.mxu0 %vm267_vm3, %v745_v15  ;;  %724 = vmatprep.subr.mxu1 %v486_v43 }
 0x314   :  { %725 = vmatpush3.msra.mxu1 %v486_v43 }
 0x315   :  { %726 = vmatprep.subr.mxu1 %v485_v44 }
 0x316   :  { %727 = vmatpush3.msra.mxu1 %v485_v44 }
 0x317   :  { %728 = vmatprep.subr.mxu1 %v484_v45 }
 0x318   :  { %729 = vmatpush3.msra.mxu1 %v484_v45 }
 0x319   :  { %731 = vmatmul.mubr.msk.f32.vlgmr.msra.gmra.mxu1 %vm267_vm3, %v751_v38 }
 0x3c3   :  { %v691_v46 = vpop.f32.mrf.mxu1 }
 0x3c4   :  { %752 = vrcp.f32 %v691_v46 }
 0x3c5   :  { %v370_v47 = vpop.f32.mrf.mxu1 }
 0x3c6   :  { %754 = vrcp.f32 %v370_v47 }
 0x3ce   :  { %v694_v48 = vpop.f32.mrf.mxu1 }
 0x3cf   :  { %756 = vrcp.f32 %v694_v48 }
 0x3d0   :  { %v380_v49 = vpop.f32.mrf.mxu1 }
 0x3d1   :  { %v753_v50 = vpop.eup %752  ;;  %758 = vrcp.f32 %v380_v49 }
 0x3d3   :  { %v755_v51 = vpop.eup %754  ;;  %v713_v53 = vpop.f32.mrf.mxu0 }
 0x3d4   :  { %v572_v54 = vmul.f32 %v753_v50, %v713_v53 }
 0x3d5   :  { %v469_v55 = vpop.f32.mrf.mxu0 }
 0x3d6   :  { %v580_v56 = vadd.f32 %v618_v52, %v572_v54  ;;  %v571_v57 = vmul.f32 %v755_v51, %v469_v55 }
 0x3d8   :  { %584 = vst.msk [vmem:[#allocation7 + $0x8] sm:$0xff] %vm66_vm0, %v580_v56  ;;  %v579_v58 = vadd.f32 %v618_v52, %v571_v57 }
 0x3d9   :  { %v732_v59 = vpop.f32.mrf.mxu1 }
 0x3da   :  { %583 = vst.msk [vmem:[#allocation7] sm:$0xff] %vm66_vm0, %v579_v58 }
 0x3db   :  { %v558_v63 = vpop.f32.mrf.mxu1 }
 0x3dc   :  { %v757_v60 = vpop.eup %756 }
 0x3dd   :  { %v574_v61 = vmul.f32 %v757_v60, %v732_v59 }
 0x3de   :  { %v759_v62 = vpop.eup %758 }
 0x3df   :  { %v582_v0 = vadd.f32 %v618_v52, %v574_v61  ;;  %v573_v1 = vmul.f32 %v759_v62, %v558_v63 }
 0x3e1   :  { %586 = vst.msk [vmem:[#allocation7 + $0x18] sm:$0xff] %vm66_vm0, %v582_v0  ;;  %v581_v2 = vadd.f32 %v618_v52, %v573_v1 }
 0x3e3   :  { %585 = vst.msk [vmem:[#allocation7 + $0x10] sm:$0xff] %vm66_vm0, %v581_v2 }
 0x3e4   :  { %811 = shalt.err (!%p808_p0)
}
 0x3e5   :  { %598 = dma.vmem_to_hbm [thread:$0]  %s593_s25, 512, %s957_s2, [#allocation4], %s827_s12, %s827_s12, %s828_s13  }
 0x3e6   :  { %824 = dma.done.wait [#allocation4], 512  }
 0x3e7   :  { %825 = vsyncadd [#allocation4], 4294966784 }
 0x3e8   :  { %602 = vsyncpa [#allocation3], 1 }
 0x3e9   :  { %603 = vsyncpa [#allocation6], 1 }
 0x3ea   :  { %604 = vsyncpa [#allocation4], 1 }

</bundles_post_ra>
